<compile_context>
chip_gen: v7x
topology: tpu7x:2x2x1
jax: 0.10.0
libtpu: 0.0.40
codegen_flags: <defaults>
</compile_context>

<pallas_src>
import functools

import jax
import jax.numpy as jnp
from jax.experimental import pallas as pl
from jax.experimental.pallas import tpu as pltpu


def _round_up(v, m):
    return (v + m - 1) // m * m


def equivariant_kernel(x_ref, rhs_ref, b1_ref, w2_ref, b2_ref, out_ref, *,
                       d_out, d_out_p):
    x = x_ref[...]                                          # (TN, d_in) f32

    # Fused LHS [x | |x|]; one f32->bf16 convert of the concatenated tile.
    lhs = jnp.concatenate([x, jnp.abs(x)], axis=-1).astype(jnp.bfloat16)

    # One MXU push against the resident block-diagonal RHS:
    #   fused[:, :d_out_p]  = x @ W
    #   fused[:, d_out_p:]  = |x| @ W1
    fused = jnp.dot(lhs, rhs_ref[...],
                    preferred_element_type=jnp.float32)     # (TN, d_out_p + d_h_p)

    lin = fused[:, :d_out_p]                                 # x @ W        (f32)
    h = jnp.maximum(fused[:, d_out_p:] + b1_ref[...], 0.0)   # relu(|x|W1+b1)

    g = jnp.dot(h.astype(jnp.bfloat16), w2_ref[...],
                preferred_element_type=jnp.float32) + b2_ref[...]  # (TN, d_out_p)

    # Store only the real d_out columns (unpadded output array).
    out_ref[...] = (lin[:, :d_out] * g[:, :d_out]).astype(out_ref.dtype)


def prepare_params(w, w1, b1, w2, b2):
    """One-time (module-init) weight prep: pad, fuse, cast to bf16."""
    d_in, d_out = w.shape
    d_hidden = w1.shape[1]
    d_out_p = _round_up(d_out, 128)
    d_hidden_p = _round_up(d_hidden, 128)

    # Block-diagonal fused RHS: [[W, 0], [0, W1]] -> (2*d_in, d_out_p + d_hidden_p)
    rhs = jnp.zeros((2 * d_in, d_out_p + d_hidden_p), jnp.float32)
    rhs = rhs.at[:d_in, :d_out].set(w.astype(jnp.float32))
    rhs = rhs.at[d_in:, d_out_p:d_out_p + d_hidden].set(w1.astype(jnp.float32))
    rhs = rhs.astype(jnp.bfloat16)

    b1_p = jnp.pad(b1.astype(jnp.float32).reshape(1, -1),
                   ((0, 0), (0, d_hidden_p - d_hidden)))
    w2_p = jnp.pad(w2.astype(jnp.float32),
                   ((0, d_hidden_p - d_hidden), (0, d_out_p - d_out))
                   ).astype(jnp.bfloat16)
    b2_p = jnp.pad(b2.astype(jnp.float32).reshape(1, -1),
                   ((0, 0), (0, d_out_p - d_out)))

    return dict(rhs=rhs, b1=b1_p, w2=w2_p, b2=b2_p,
                d_in=d_in, d_out=d_out, d_out_p=d_out_p, d_hidden_p=d_hidden_p)


def equivariant_forward(x, params, *, tn=1024):
    """x: (N, d_in) f32; params from prepare_params(); returns (N, d_out) f32."""
    n, d_in = x.shape
    d_out = params["d_out"]
    d_out_p = params["d_out_p"]
    d_hidden_p = params["d_hidden_p"]
    rhs, b1_p, w2_p, b2_p = params["rhs"], params["b1"], params["w2"], params["b2"]
    assert rhs.shape[0] == 2 * d_in

    # Row tile: multiple of 8 sublanes; keep >= 2 grid steps when rows allow
    # so the "parallel" axis can shard across v7x's two TensorCores.
    tn_eff = min(tn, _round_up(n, 8))
    if n >= 16:
        tn_eff = min(tn_eff, _round_up(pl.cdiv(n, 2), 8))
    n_p = _round_up(n, tn_eff)

    x_p = jnp.pad(x, ((0, n_p - n), (0, 0))) if n_p != n else x
    grid = (n_p // tn_eff,)

    # Honest VMEM estimate: double-buffered x/out tiles + (double-buffered)
    # resident weights + a few full-width f32 intermediates; limit ~2x need.
    x_tile_b = 4 * tn_eff * d_in
    out_tile_b = 4 * tn_eff * d_out
    weight_b = 2 * rhs.size + 2 * w2_p.size + 4 * (b1_p.size + b2_p.size)
    interm_b = 3 * 4 * tn_eff * (d_out_p + d_hidden_p)
    vmem_needed = 2 * (x_tile_b + out_tile_b) + 2 * weight_b + interm_b
    vmem_limit = int(min(max(2 * vmem_needed, 4 * 1024 * 1024),
                         64 * 1024 * 1024))

    flops = 2 * n_p * (2 * d_in * (d_out_p + d_hidden_p) + d_hidden_p * d_out_p)
    bytes_accessed = 4 * n_p * d_in + 4 * n_p * d_out + weight_b
    cost = pl.CostEstimate(flops=flops, transcendentals=0,
                           bytes_accessed=bytes_accessed)

    kernel = functools.partial(equivariant_kernel, d_out=d_out, d_out_p=d_out_p)

    out = pl.pallas_call(
        kernel,
        out_shape=jax.ShapeDtypeStruct((n_p, d_out), jnp.float32),
        grid=grid,
        in_specs=[
            pl.BlockSpec((tn_eff, d_in), lambda i: (i, 0)),   # x tile (pipelined)
            pl.BlockSpec(rhs.shape, lambda i: (0, 0)),        # blockdiag(W, W1)  resident
            pl.BlockSpec(b1_p.shape, lambda i: (0, 0)),       # b1                resident
            pl.BlockSpec(w2_p.shape, lambda i: (0, 0)),       # W2                resident
            pl.BlockSpec(b2_p.shape, lambda i: (0, 0)),       # b2                resident
        ],
        out_specs=pl.BlockSpec((tn_eff, d_out), lambda i: (i, 0)),  # unpadded out
        compiler_params=pltpu.CompilerParams(
            dimension_semantics=("parallel",),
            vmem_limit_bytes=vmem_limit,
        ),
        cost_estimate=cost,
    )(x_p, rhs, b1_p, w2_p, b2_p)

    return out[:n] if n_p != n else out


def equivariant_reference(x, w, w1, b1, w2, b2):
    """Plain-JAX f32 reference mirroring EquivariantLayer.forward (defaults)."""
    lin = x @ w
    h = jnp.maximum(jnp.abs(x) @ w1 + b1, 0.0)
    g = h @ w2 + b2
    return lin * g


if __name__ == "__main__":
    # Small shapes consistent with the module's forward.
    N, d_in, d_hidden, d_out = 512, 16, 32, 8

    key = jax.random.PRNGKey(0)
    kx, kw, k1, kb1, k2, kb2 = jax.random.split(key, 6)
    scale = 0.1
    x = jax.random.normal(kx, (N, d_in), jnp.float32)
    w = scale * jax.random.normal(kw, (d_in, d_out), jnp.float32)      # W (no bias)
    w1 = scale * jax.random.normal(k1, (d_in, d_hidden), jnp.float32)  # phi layer 1
    b1 = scale * jax.random.normal(kb1, (d_hidden,), jnp.float32)
    w2 = scale * jax.random.normal(k2, (d_hidden, d_out), jnp.float32) # phi layer 2
    b2 = scale * jax.random.normal(kb2, (d_out,), jnp.float32)

    # Hoisted once (module init), not per forward call.
    params = prepare_params(w, w1, b1, w2, b2)

    out = equivariant_forward(x, params)
    out = jax.block_until_ready(out)

    ref = equivariant_reference(x, w, w1, b1, w2, b2)
    assert out.shape == (N, d_out)
    max_err = float(jnp.max(jnp.abs(out - ref)))
    # bf16 matmul operands with f32 accumulation -> percent-level tolerance.
    assert jnp.allclose(out, ref, atol=2e-2, rtol=2e-2), ("max_err", max_err)

    print("KERNEL_OK")
</pallas_src>

<mosaic_0001>
module attributes {stable_mosaic.version = 11 : i64} {
  func.func @equivariant_kernel(%arg0: i32, %arg1: memref<256x16xf32, #tpu.memory_space<vmem>>, %arg2: memref<32x256xbf16, #tpu.memory_space<vmem>>, %arg3: memref<1x128xf32, #tpu.memory_space<vmem>>, %arg4: memref<128x128xbf16, #tpu.memory_space<vmem>>, %arg5: memref<1x128xf32, #tpu.memory_space<vmem>>, %arg6: memref<256x8xf32, #tpu.memory_space<vmem>>) attributes {dimension_semantics = [#tpu.dimension_semantics<parallel>], iteration_bounds = array<i64: 2>, scalar_prefetch = 0 : i64, scratch_operands = 0 : i64, tpu.core_type = #tpu.core_type<tc>, window_params = [{transform_indices = @transform_0, window_bounds = array<i64: 256, 16>}, {pipeline_mode = #tpu.pipeline_mode<synchronous>, transform_indices = @transform_1, window_bounds = array<i64: 32, 256>}, {pipeline_mode = #tpu.pipeline_mode<synchronous>, transform_indices = @transform_2, window_bounds = array<i64: 1, 128>}, {pipeline_mode = #tpu.pipeline_mode<synchronous>, transform_indices = @transform_3, window_bounds = array<i64: 128, 128>}, {pipeline_mode = #tpu.pipeline_mode<synchronous>, transform_indices = @transform_4, window_bounds = array<i64: 1, 128>}, {transform_indices = @transform_5, window_bounds = array<i64: 256, 8>}]} {
    %c0 = arith.constant 0 : index
    %c0_0 = arith.constant 0 : index
    %0 = vector.load %arg1[%c0, %c0_0] : memref<256x16xf32, #tpu.memory_space<vmem>>, vector<256x16xf32>
    %1 = math.absf %0 : vector<256x16xf32>
    %2 = tpu.concatenate %0, %1 in 1 : vector<256x16xf32>, vector<256x16xf32> -> vector<256x32xf32>
    %3 = arith.truncf %2 : vector<256x32xf32> to vector<256x32xbf16>
    %c0_1 = arith.constant 0 : index
    %c0_2 = arith.constant 0 : index
    %4 = vector.load %arg2[%c0_1, %c0_2] : memref<32x256xbf16, #tpu.memory_space<vmem>>, vector<32x256xbf16>
    %cst = arith.constant dense<0.000000e+00> : vector<256x256xf32>
    %5 = tpu.matmul %3, %4, %cst {dimension_numbers = #tpu.dot_dimension_numbers<[1], [0], [0], [1], [0, 0, 1, 1], [], []>} : vector<256x32xbf16>, vector<32x256xbf16>, vector<256x256xf32> -> vector<256x256xf32>
    %6 = vector.extract_strided_slice %5 {offsets = [0, 0], sizes = [256, 128], strides = [1, 1]} : vector<256x256xf32> to vector<256x128xf32>
    %7 = vector.extract_strided_slice %5 {offsets = [0, 128], sizes = [256, 128], strides = [1, 1]} : vector<256x256xf32> to vector<256x128xf32>
    %c0_3 = arith.constant 0 : index
    %c0_4 = arith.constant 0 : index
    %8 = vector.load %arg3[%c0_3, %c0_4] : memref<1x128xf32, #tpu.memory_space<vmem>>, vector<1x128xf32>
    %9 = vector.broadcast %8 : vector<1x128xf32> to vector<256x128xf32>
    %10 = arith.addf %7, %9 : vector<256x128xf32>
    %cst_5 = arith.constant 0.000000e+00 : f32
    %11 = vector.broadcast %cst_5 : f32 to vector<256x128xf32>
    %12 = arith.maximumf %10, %11 : vector<256x128xf32>
    %13 = arith.truncf %12 : vector<256x128xf32> to vector<256x128xbf16>
    %c0_6 = arith.constant 0 : index
    %c0_7 = arith.constant 0 : index
    %14 = vector.load %arg4[%c0_6, %c0_7] : memref<128x128xbf16, #tpu.memory_space<vmem>>, vector<128x128xbf16>
    %cst_8 = arith.constant dense<0.000000e+00> : vector<256x128xf32>
    %15 = tpu.matmul %13, %14, %cst_8 {dimension_numbers = #tpu.dot_dimension_numbers<[1], [0], [0], [1], [0, 0, 1, 1], [], []>} : vector<256x128xbf16>, vector<128x128xbf16>, vector<256x128xf32> -> vector<256x128xf32>
    %c0_9 = arith.constant 0 : index
    %c0_10 = arith.constant 0 : index
    %16 = vector.load %arg5[%c0_9, %c0_10] : memref<1x128xf32, #tpu.memory_space<vmem>>, vector<1x128xf32>
    %17 = vector.broadcast %16 : vector<1x128xf32> to vector<256x128xf32>
    %18 = arith.addf %15, %17 : vector<256x128xf32>
    %19 = vector.extract_strided_slice %6 {offsets = [0, 0], sizes = [256, 8], strides = [1, 1]} : vector<256x128xf32> to vector<256x8xf32>
    %20 = vector.extract_strided_slice %18 {offsets = [0, 0], sizes = [256, 8], strides = [1, 1]} : vector<256x128xf32> to vector<256x8xf32>
    %21 = arith.mulf %19, %20 : vector<256x8xf32>
    %c0_11 = arith.constant 0 : index
    %c0_12 = arith.constant 0 : index
    %22 = vector.load %arg6[%c0_11, %c0_12] : memref<256x8xf32, #tpu.memory_space<vmem>>, vector<256x8xf32>
    tpu.vector_store %arg6[%c0_11, %c0_12], %21 {strides = array<i32>} : memref<256x8xf32, #tpu.memory_space<vmem>>, vector<256x8xf32>,
    return
  }
  func.func @transform_0(%arg0: i32) -> (i32, i32) {
    %c0_i32 = arith.constant 0 : i32
    %c0_i32_0 = arith.constant 0 : i32
    return %arg0, %c0_i32 : i32, i32
  }
  func.func @transform_1(%arg0: i32) -> (i32, i32) {
    %c0_i32 = arith.constant 0 : i32
    %c0_i32_0 = arith.constant 0 : i32
    %c0_i32_1 = arith.constant 0 : i32
    return %c0_i32, %c0_i32_0 : i32, i32
  }
  func.func @transform_2(%arg0: i32) -> (i32, i32) {
    %c0_i32 = arith.constant 0 : i32
    %c0_i32_0 = arith.constant 0 : i32
    %c0_i32_1 = arith.constant 0 : i32
    return %c0_i32, %c0_i32_0 : i32, i32
  }
  func.func @transform_3(%arg0: i32) -> (i32, i32) {
    %c0_i32 = arith.constant 0 : i32
    %c0_i32_0 = arith.constant 0 : i32
    %c0_i32_1 = arith.constant 0 : i32
    return %c0_i32, %c0_i32_0 : i32, i32
  }
  func.func @transform_4(%arg0: i32) -> (i32, i32) {
    %c0_i32 = arith.constant 0 : i32
    %c0_i32_0 = arith.constant 0 : i32
    %c0_i32_1 = arith.constant 0 : i32
    return %c0_i32, %c0_i32_0 : i32, i32
  }
  func.func @transform_5(%arg0: i32) -> (i32, i32) {
    %c0_i32 = arith.constant 0 : i32
    %c0_i32_0 = arith.constant 0 : i32
    return %arg0, %c0_i32 : i32, i32
  }
}

</mosaic_0001>

<bundles_post_ra>
// kernel: tpu_custom_call.1
= control target key start
LH: loop header
LB: loop body
LE: loop exit
PB: predicated region body
PF: predicated region fallthrough
CT: control target
= control target key end

     0   :  { %s1437_s18 = smov 0   ;;  %s2012_s0 = inlined_call_operand.vmem [shape: f32[512,16], index: 0, kind: input, shape index: {}]   ;;  %s2013_s1 = inlined_call_operand.vmem [shape: bf16[32,256], index: 1, kind: input, shape index: {}]   ;;  %s2014_s2 = inlined_call_operand.vmem [shape: f32[1,128], index: 2, kind: input, shape index: {}]   ;;  %s2015_s3 = inlined_call_operand.vmem [shape: bf16[128,128], index: 3, kind: input, shape index: {}]   ;;  %s2016_s4 = inlined_call_operand.vmem [shape: f32[1,128], index: 4, kind: input, shape index: {}]   ;;  %s2017_s5 = inlined_call_operand.vmem [shape: f32[512,8], index: 5, kind: output, shape index: {}]  }
   0x1 LB: > { %s1176_s19 = sadd.s32 4294967295, %s1403_s18   ;;  %p1180_p0 = scmp.ge.s32.totalorder %s1403_s18, 1  ;;  %s1403_s18 = sphi %s1437_s18, %s15_s18  }
   0x2   : > { %p188_p1 = scmp.lt.s32.totalorder %s1403_s18, 3 }
   0x4   : > { %p189_p2 = pnand %p1180_p0, %p188_p1 }
   0x5   : > { %s1181_s20 = sshll.u32 (!%p189_p2), %s1176_s19, 5  ;;  %v1383_v0 = vld [vmem:[%s2013_s1 + $0x4] ss:$8 sps:$4 sm:$0xff] (!%p189_p2)   ;;  %v1385_v1 = vld [vmem:[%s2013_s1] ss:$8 sps:$4 sm:$0xff] (!%p189_p2)   ;;  %v1405_v4 = vmov (!%p189_p2), 0  }
   0x6   : > { %192 = sbr.rel (%p189_p2) target bundleno = 686 (0x2ae), region = 40  ;;  %p217_p3 = scmp.lt.s32.totalorder (!%p189_p2), %s1181_s20, 63  ;;  %543 = vmatprep.subr.bf16.mxu0 (!%p189_p2), %v1383_v0  ;;  %v1386_v2 = vld [vmem:[%s2013_s1 + $0x14] ss:$8 sps:$4 sm:$0xff] (!%p189_p2)   ;;  %v1388_v3 = vld [vmem:[%s2013_s1 + $0x10] ss:$8 sps:$4 sm:$0xff] (!%p189_p2)   ;;  %1289 = vmatprep.subr.bf16.mxu1 (!%p189_p2), %v1383_v0 }
   0x7   : > { %544 = vmatpush1.bf16.msra.mxu0 (!%p189_p2), %v1385_v1  ;;  %575 = vmatprep.mubr.bf16.mxu0 (!%p189_p2), %v1405_v4  ;;  %s1406_s8 = smov (!%p189_p2), 16   ;;  %vm421_vm0 = vcmask (!%p189_p2), 130048   ;;  %vm494_vm1 = vcmask (!%p189_p2), 261120   ;;  %vm1087_vm2 = vcmask (!%p189_p2), 64512  }
   0x8   : > { %545 = vmatprep.subr.bf16.mxu0 (!%p189_p2), %v1386_v2  ;;  %1291 = vmatpush1.bf16.msra.mxu1 (!%p189_p2), %v1385_v1 }
   0x9   : > { %1290 = vmatprep.subr.bf16.mxu1 (!%p189_p2), %v1386_v2  ;;  %695 = vmatprep.mubr.bf16.mxu1 (!%p189_p2), %v1405_v4 }
   0xb   : > { %546 = vmatpush1.bf16.msra.mxu0 (!%p189_p2), %v1388_v3 }
   0xc   : > { %1292 = vmatpush1.bf16.msra.mxu1 (!%p189_p2), %v1388_v3 }
   0xd   : > { %s2019_s20 = smov (!%p217_p3, %s1181_s20), 63 }
   0xe   : > { %s1182_s29 = sshll.u32 %s2019_s20, 3 }
   0xf   : > { %s1467_s7 = scalar_lea.vmem %s2012_s0, %s1182_s29  ;;  %s1880_s9 = scalar_lea.vmem %s2017_s5, %s1182_s29 }
  0x10   : > { %v1470_v5 = vld [vmem:[%s1467_s7] sm:$0xff]  ;;  %v1473_v6 = vld [vmem:[%s1467_s7 + $0x8] sm:$0xff]  ;;  %v1476_v7 = vld [vmem:[%s1467_s7 + $0x10] sm:$0xff] }
  0x11   : > { %v261_v8 = vand.u32 2147483647, %v1470_v5  ;;  %v262_v9 = vand.u32 2147483647, %v1473_v6  ;;  %v1481_v10 = vld [vmem:[%s1467_s7 + $0x18] sm:$0xff]  ;;  %v1484_v11 = vld [vmem:[%s1467_s7 + $0x20] sm:$0xff] }
  0x12   : > { %v263_v12 = vand.u32 2147483647, %v1476_v7  ;;  %v264_v13 = vand.u32 2147483647, %v1481_v10  ;;  %v1489_v14 = vld [vmem:[%s1467_s7 + $0x28] sm:$0xff]  ;;  %v1492_v15 = vld [vmem:[%s1467_s7 + $0x30] sm:$0xff] }
  0x13   : > { %v1303_v16 = vpack.i.bf16 %v262_v9, %v261_v8  ;;  %v265_v17 = vand.u32 2147483647, %v1484_v11  ;;  %v266_v18 = vand.u32 2147483647, %v1489_v14  ;;  %v1497_v19 = vld [vmem:[%s1467_s7 + $0x38] sm:$0xff]  ;;  %v1500_v20 = vld [vmem:[%s1467_s7 + $0x40] sm:$0xff] }
  0x14   : > { %v267_v21 = vand.u32 2147483647, %v1492_v15  ;;  %v268_v22 = vand.u32 2147483647, %v1497_v19  ;;  %v1505_v23 = vld [vmem:[%s1467_s7 + $0x48] sm:$0xff]  ;;  %v1508_v24 = vld [vmem:[%s1467_s7 + $0x50] sm:$0xff]  ;;  %v1308_v25 = vpack.i.bf16 %v264_v13, %v263_v12 }
  0x15   : > { %1304 = vrot.lane.b32.xlu0 %v1303_v16, %s1406_s8  ;;  %v1313_v26 = vpack.i.bf16 %v266_v18, %v265_v17  ;;  %v269_v27 = vand.u32 2147483647, %v1500_v20  ;;  %v270_v28 = vand.u32 2147483647, %v1505_v23  ;;  %v1514_v29 = vld [vmem:[%s1467_s7 + $0x58] sm:$0xff]  ;;  %v1517_v30 = vld [vmem:[%s1467_s7 + $0x60] sm:$0xff] }
  0x16   : > { %v1520_v31 = vld [vmem:[%s1467_s7 + $0x68] sm:$0xff]  ;;  %v1318_v32 = vpack.i.bf16 %v268_v22, %v267_v21  ;;  %v271_v33 = vand.u32 2147483647, %v1508_v24  ;;  %v272_v34 = vand.u32 2147483647, %v1514_v29  ;;  %v1526_v35 = vld [vmem:[%s1467_s7 + $0x70] sm:$0xff] }
  0x17   : > { %1314 = vrot.lane.b32.xlu1 %v1313_v26, %s1406_s8  ;;  %v1529_v36 = vld [vmem:[%s1467_s7 + $0x78] sm:$0xff]  ;;  %v1323_v37 = vpack.i.bf16 %v270_v28, %v269_v27  ;;  %v273_v38 = vand.u32 2147483647, %v1517_v30  ;;  %v274_v39 = vand.u32 2147483647, %v1520_v31  ;;  %v1535_v40 = vld [vmem:[%s1467_s7 + $0x80] sm:$0xff] }
  0x18   : > { %v1538_v41 = vld [vmem:[%s1467_s7 + $0x88] sm:$0xff]  ;;  %v1328_v42 = vpack.i.bf16 %v272_v34, %v271_v33  ;;  %v275_v43 = vand.u32 2147483647, %v1526_v35  ;;  %v276_v44 = vand.u32 2147483647, %v1529_v36  ;;  %v1544_v45 = vld [vmem:[%s1467_s7 + $0x90] sm:$0xff] }
  0x19   : > { %1309 = vrot.lane.b32.xlu0 %v1308_v25, %s1406_s8  ;;  %v1547_v46 = vld [vmem:[%s1467_s7 + $0x98] sm:$0xff]  ;;  %v1550_v47 = vld [vmem:[%s1467_s7 + $0xa0] sm:$0xff]  ;;  %v1333_v48 = vpack.i.bf16 %v274_v39, %v273_v38  ;;  %v277_v49 = vand.u32 2147483647, %v1535_v40  ;;  %v278_v50 = vand.u32 2147483647, %v1538_v41 }
  0x1a   : > { %v1556_v51 = vld [vmem:[%s1467_s7 + $0xa8] sm:$0xff]  ;;  %v1559_v52 = vld [vmem:[%s1467_s7 + $0xc0] sm:$0xff]  ;;  %v1338_v53 = vpack.i.bf16 %v276_v44, %v275_v43  ;;  %v279_v54 = vand.u32 2147483647, %v1544_v45  ;;  %v280_v55 = vand.u32 2147483647, %v1547_v46 }
  0x1b   : > { %1319 = vrot.lane.b32.xlu1 %v1318_v32, %s1406_s8  ;;  %v281_v56 = vand.u32 2147483647, %v1550_v47  ;;  %v1566_v57 = vld [vmem:[%s1467_s7 + $0xc8] sm:$0xff]  ;;  %v282_v58 = vand.u32 2147483647, %v1556_v51  ;;  %v1570_v59 = vld [vmem:[%s1467_s7 + $0xb0] sm:$0xff]  ;;  %v1343_v60 = vpack.i.bf16 %v278_v50, %v277_v49 }
  0x1c   : > { %v1574_v61 = vld [vmem:[%s1467_s7 + $0xb8] sm:$0xff]  ;;  %v1348_v62 = vpack.i.bf16 %v280_v55, %v279_v54  ;;  %v285_v63 = vand.u32 2147483647, %v1559_v52  ;;  %v286_v0 = vand.u32 2147483647, %v1566_v57  ;;  %v1580_v1 = vld [vmem:[%s1467_s7 + $0xd0] sm:$0xff] }
  0x1d   : > { %1324 = vrot.lane.b32.xlu0 %v1323_v37, %s1406_s8  ;;  %v1583_v2 = vld [vmem:[%s1467_s7 + $0xd8] sm:$0xff]  ;;  %v1353_v3 = vpack.i.bf16 %v282_v58, %v281_v56  ;;  %v283_v8 = vand.u32 2147483647, %v1570_v59  ;;  %v284_v9 = vand.u32 2147483647, %v1574_v61  ;;  %v1589_v12 = vld [vmem:[%s1467_s7 + $0xe0] sm:$0xff] }
  0x1e   : > { %v1592_v13 = vld [vmem:[%s1467_s7 + $0xe8] sm:$0xff]  ;;  %v1358_v16 = vpack.i.bf16 %v286_v0, %v285_v63  ;;  %v287_v17 = vand.u32 2147483647, %v1580_v1  ;;  %v288_v18 = vand.u32 2147483647, %v1583_v2  ;;  %v1598_v21 = vld [vmem:[%s1467_s7 + $0xf0] sm:$0xff] }
  0x1f   : > { %1329 = vrot.lane.b32.xlu1 %v1328_v42, %s1406_s8  ;;  %v1601_v22 = vld [vmem:[%s1467_s7 + $0xf8] sm:$0xff]  ;;  %v1363_v25 = vpack.i.bf16 %v284_v9, %v283_v8  ;;  %v289_v26 = vand.u32 2147483647, %v1589_v12  ;;  %v290_v27 = vand.u32 2147483647, %v1592_v13  ;;  %v1389_v38 = vld [vmem:[%s2015_s3] sm:$0xff]  }
  0x20   : > { %v1368_v28 = vpack.i.bf16 %v288_v18, %v287_v17  ;;  %v291_v32 = vand.u32 2147483647, %v1598_v21  ;;  %v292_v33 = vand.u32 2147483647, %v1601_v22  ;;  %1241 = vmatprep.subr.bf16.mxu1 %v1389_v38 }
  0x21   : > { %1334 = vrot.lane.b32.xlu0 %v1333_v48, %s1406_s8  ;;  %v1373_v34 = vpack.i.bf16 %v290_v27, %v289_v26 }
  0x22   : > { %v1378_v37 = vpack.i.bf16 %v292_v33, %v291_v32 }
  0x23   : > { %1339 = vrot.lane.b32.xlu1 %v1338_v53, %s1406_s8 }
  0x25   : > { %1344 = vrot.lane.b32.xlu0 %v1343_v60, %s1406_s8 }
  0x27   : > { %1349 = vrot.lane.b32.xlu1 %v1348_v62, %s1406_s8 }
  0x29   : > { %1354 = vrot.lane.b32.xlu0 %v1353_v3, %s1406_s8 }
  0x2b   : > { %1359 = vrot.lane.b32.xlu1 %v1358_v16, %s1406_s8 }
  0x2d   : > { %1364 = vrot.lane.b32.xlu0 %v1363_v25, %s1406_s8 }
  0x2f   : > { %1369 = vrot.lane.b32.xlu1 %v1368_v28, %s1406_s8 }
  0x31   : > { %1374 = vrot.lane.b32.xlu0 %v1373_v34, %s1406_s8 }
  0x33   : > { %1379 = vrot.lane.b32.xlu1 %v1378_v37, %s1406_s8 }
  0x87   : > { %v1305_v39 = vpop.permute.xlu0 %1304 }
  0x88   : > { %v1307_v42 = vunpack.i.h.bf16 %v1305_v39  ;;  %v1306_v43 = vunpack.i.l.bf16 %v1305_v39 }
  0x89   : > { %v1315_v44 = vpop.permute.xlu1 %1314 }
  0x8a   : > { %v423_v48 = vsel %vm421_vm0, %v1473_v6, %v1307_v42  ;;  %v422_v49 = vsel %vm421_vm0, %v1470_v5, %v1306_v43  ;;  %v1317_v5 = vunpack.i.h.bf16 %v1315_v44  ;;  %v1316_v0 = vunpack.i.l.bf16 %v1315_v44 }
  0x8b   : > { %v454_v50 = vpack.c.bf16 %v423_v48, %v422_v49  ;;  %v1310_v53 = vpop.permute.xlu0 %1309 }
  0x8c   : > { %v1312_v54 = vunpack.i.h.bf16 %v1310_v53  ;;  %v1311_v55 = vunpack.i.l.bf16 %v1310_v53  ;;  %v1391_v53 = vld [vmem:[%s2015_s3 + $0x10] sm:$0xff]  }
  0x8d   : > { %1189 = vmatmul.mubr.msk.bf16.vlgmr.msra.gmra.mrb[0].mxu0 %vm494_vm1, %v454_v50  ;;  %v1320_v56 = vpop.permute.xlu1 %1319 }
  0x8e   : > { %v425_v58 = vsel %vm421_vm0, %v1481_v10, %v1312_v54  ;;  %v424_v60 = vsel %vm421_vm0, %v1476_v7, %v1311_v55  ;;  %585 = vmatprep.mubr.bf16.mxu0 %v1405_v4  ;;  %v427_v10 = vsel %vm421_vm0, %v1489_v14, %v1317_v5  ;;  %v426_v7 = vsel %vm421_vm0, %v1484_v11, %v1316_v0 }
  0x8f   : > { %v1325_v6 = vpop.permute.xlu0 %1324  ;;  %v455_v62 = vpack.c.bf16 %v425_v58, %v424_v60  ;;  %v456_v16 = vpack.c.bf16 %v427_v10, %v426_v7  ;;  %v1322_v18 = vunpack.i.h.bf16 %v1320_v56  ;;  %v1321_v25 = vunpack.i.l.bf16 %v1320_v56  ;;  %v1392_v58 = vld [vmem:[%s2015_s3 + $0x18] sm:$0xff]  }
  0x90   : > { %v1326_v44 = vunpack.i.l.bf16 %v1325_v6 }
  0x91   : > { %v1626_v63 = vpop.permute.xlu1 %1329  ;;  %v429_v14 = vsel %vm421_vm0, %v1497_v19, %v1322_v18  ;;  %v428_v11 = vsel %vm421_vm0, %v1492_v15, %v1321_v25  ;;  %v1390_v19 = vld [vmem:[%s2015_s3 + $0x8] sm:$0xff]   ;;  %v1327_v15 = vunpack.i.h.bf16 %v1325_v6 }
  0x92   : > { %v457_v39 = vpack.c.bf16 %v429_v14, %v428_v11  ;;  %v1332_v60 = vunpack.i.h.bf16 %v1626_v63  ;;  %v1331_v6 = vunpack.i.l.bf16 %v1626_v63 }
  0x93   : > { %v1628_v3 = vpop.permute.xlu0 %1334  ;;  %v431_v54 = vsel %vm421_vm0, %v1505_v23, %v1327_v15 }
  0x94   : > { %v433_v5 = vsel %vm421_vm0, %v1514_v29, %v1332_v60  ;;  %v432_v63 = vsel %vm421_vm0, %v1508_v24, %v1331_v6  ;;  %v1337_v7 = vunpack.i.h.bf16 %v1628_v3 }
  0x95   : > { %1190 = vmatmul.mubr.msk.bf16.gmra.mrb[4].mxu0 %vm494_vm1, %v455_v62  ;;  %v1631_v8 = vpop.permute.xlu1 %1339 }
  0x96   : > { %595 = vmatprep.mubr.bf16.mxu0 %v1405_v4  ;;  %v435_v24 = vsel %vm421_vm0, %v1520_v31, %v1337_v7  ;;  %v1342_v14 = vunpack.i.h.bf16 %v1631_v8 }
  0x97   : > { %v1638_v9 = vpop.permute.xlu0 %1344 }
  0x98   : > { %v1347_v11 = vunpack.i.h.bf16 %v1638_v9 }
  0x99   : > { %v1640_v17 = vpop.permute.xlu1 %1349 }
  0x9b   : > { %v1642_v26 = vpop.permute.xlu0 %1354 }
  0x9d   : > { %1191 = vmatmul.mubr.msk.bf16.gmra.mrb[8].mxu0 %vm494_vm1, %v456_v16  ;;  %v1360_v27 = vpop.permute.xlu1 %1359  ;;  %v1336_v16 = vunpack.i.l.bf16 %v1628_v3 }
  0x9e   : > { %605 = vmatprep.mubr.bf16.mxu0 %v1405_v4  ;;  %v1362_v28 = vunpack.i.h.bf16 %v1360_v27  ;;  %v1361_v32 = vunpack.i.l.bf16 %v1360_v27 }
  0x9f   : > { %v1650_v33 = vpop.permute.xlu0 %1364  ;;  %v434_v25 = vsel %vm421_vm0, %v1517_v30, %v1336_v16 }
  0xa0   : > { %v447_v34 = vsel %vm421_vm0, %v1566_v57, %v1362_v28  ;;  %v446_v37 = vsel %vm421_vm0, %v1559_v52, %v1361_v32  ;;  %v460_v27 = vpack.c.bf16 %v435_v24, %v434_v25  ;;  %v1346_v28 = vunpack.i.l.bf16 %v1638_v9 }
  0xa1   : > { %v466_v42 = vpack.c.bf16 %v447_v34, %v446_v37  ;;  %v1370_v43 = vpop.permute.xlu1 %1369  ;;  %v1351_v34 = vunpack.i.l.bf16 %v1640_v17 }
  0xa2   : > { %v1372_v48 = vunpack.i.h.bf16 %v1370_v43  ;;  %v1371_v49 = vunpack.i.l.bf16 %v1370_v43  ;;  %v438_v32 = vsel %vm421_vm0, %v1535_v40, %v1346_v28  ;;  %v1357_v40 = vunpack.i.h.bf16 %v1642_v26 }
  0xa3   : > { %1201 = vmatmul.mubr.msk.bf16.vlgmr.msra.gmra.mrb[0].mxu1 %vm494_vm1, %v466_v42  ;;  %v1375_v52 = vpop.permute.xlu0 %1374  ;;  %v440_v37 = vsel %vm421_vm0, %v1544_v45, %v1351_v34  ;;  %v1367_v45 = vunpack.i.h.bf16 %v1650_v33  ;;  %v1366_v43 = vunpack.i.l.bf16 %v1650_v33  ;;  %v1394_v33 = vld [vmem:[%s2015_s3 + $0x28] sm:$0xff]  }
  0xa4   : > { %v449_v50 = vsel %vm421_vm0, %v1583_v2, %v1372_v48  ;;  %v448_v57 = vsel %vm421_vm0, %v1580_v1, %v1371_v49  ;;  %705 = vmatprep.mubr.bf16.mxu1 %v1405_v4  ;;  %1242 = vmatpush3.bf16.msra.mxu1 %v1389_v38  ;;  %v430_v2 = vsel %vm421_vm0, %v1500_v20, %v1326_v44  ;;  %v1377_v55 = vunpack.i.h.bf16 %v1375_v52 }
  0xa5   : > { %1192 = vmatmul.mubr.msk.bf16.gmra.mrb[12].mxu0 %vm494_vm1, %v457_v39  ;;  %1243 = vmatprep.subr.bf16.mxu1 %v1390_v19  ;;  %v467_v1 = vpack.c.bf16 %v449_v50, %v448_v57  ;;  %v1376_v56 = vunpack.i.l.bf16 %v1375_v52  ;;  %v458_v38 = vpack.c.bf16 %v431_v54, %v430_v2  ;;  %v1380_v62 = vpop.permute.xlu1 %1379  ;;  %v1356_v39 = vunpack.i.l.bf16 %v1642_v26 }
  0xa6   : > { %615 = vmatprep.mubr.bf16.mxu0 %v1405_v4  ;;  %v451_v20 = vsel %vm421_vm0, %v1592_v13, %v1377_v55  ;;  %v1382_v13 = vunpack.i.h.bf16 %v1380_v62  ;;  %v1381_v10 = vunpack.i.l.bf16 %v1380_v62  ;;  %v445_v26 = vsel %vm421_vm0, %v1574_v61, %v1367_v45  ;;  %v1762_v61 = vld [vmem:[%s2014_s2] ss:$0 sm:$0xff] }
  0xa7   : > { %v450_v23 = vsel %vm421_vm0, %v1589_v12, %v1376_v56  ;;  %v459_v12 = vpack.c.bf16 %v433_v5, %v432_v63  ;;  %v442_v42 = vsel %vm421_vm0, %v1550_v47, %v1356_v39  ;;  %v1393_v47 = vld [vmem:[%s2015_s3 + $0x20] sm:$0xff]  }
  0xa8   : > { %1244 = vmatpush3.bf16.msra.mxu1 %v1390_v19  ;;  %v468_v0 = vpack.c.bf16 %v451_v20, %v450_v23  ;;  %v453_v18 = vsel %vm421_vm0, %v1601_v22, %v1382_v13  ;;  %v452_v29 = vsel %vm421_vm0, %v1598_v21, %v1381_v10  ;;  %v1341_v22 = vunpack.i.l.bf16 %v1631_v8 }
  0xa9   : > { %1245 = vmatprep.subr.bf16.mxu1 %v1391_v53  ;;  %v469_v3 = vpack.c.bf16 %v453_v18, %v452_v29  ;;  %v437_v21 = vsel %vm421_vm0, %v1529_v36, %v1342_v14  ;;  %v439_v8 = vsel %vm421_vm0, %v1538_v41, %v1347_v11  ;;  %v444_v19 = vsel %vm421_vm0, %v1570_v59, %v1366_v43  ;;  %v1395_v59 = vld [vmem:[%s2015_s3 + $0x30] sm:$0xff]  }
  0xaa   : > { %v436_v31 = vsel %vm421_vm0, %v1526_v35, %v1341_v22  ;;  %v462_v36 = vpack.c.bf16 %v439_v8, %v438_v32  ;;  %v1352_v35 = vunpack.i.h.bf16 %v1640_v17  ;;  %v443_v17 = vsel %vm421_vm0, %v1556_v51, %v1357_v40 }
  0xab   : > { %1202 = vmatmul.mubr.msk.bf16.gmra.mrb[4].mxu1 %vm494_vm1, %v467_v1  ;;  %v461_v30 = vpack.c.bf16 %v437_v21, %v436_v31  ;;  %v465_v51 = vpack.c.bf16 %v445_v26, %v444_v19 }
  0xac   : > { %715 = vmatprep.mubr.bf16.mxu1 %v1405_v4  ;;  %1246 = vmatpush3.bf16.msra.mxu1 %v1391_v53  ;;  %v441_v9 = vsel %vm421_vm0, %v1547_v46, %v1352_v35  ;;  %v464_v46 = vpack.c.bf16 %v443_v17, %v442_v42 }
  0xad   : > { %1193 = vmatmul.mubr.msk.bf16.gmra.mrb[16].mxu0 %vm494_vm1, %v458_v38  ;;  %1247 = vmatprep.subr.bf16.mxu1 %v1392_v58  ;;  %v463_v41 = vpack.c.bf16 %v441_v9, %v440_v37 }
  0xae   : > { %625 = vmatprep.mubr.bf16.mxu0 %v1405_v4 }
  0xb0   : > { %1248 = vmatpush3.bf16.msra.mxu1 %v1392_v58 }
  0xb1   : > { %1249 = vmatprep.subr.bf16.mxu1 %v1393_v47 }
  0xb3   : > { %1203 = vmatmul.mubr.msk.bf16.gmra.mrb[8].mxu1 %vm494_vm1, %v468_v0 }
  0xb4   : > { %725 = vmatprep.mubr.bf16.mxu1 %v1405_v4  ;;  %1250 = vmatpush3.bf16.msra.mxu1 %v1393_v47 }
  0xb5   : > { %1194 = vmatmul.mubr.msk.bf16.gmra.mrb[20].mxu0 %vm494_vm1, %v459_v12  ;;  %1251 = vmatprep.subr.bf16.mxu1 %v1394_v33 }
  0xb6   : > { %635 = vmatprep.mubr.bf16.mxu0 %v1405_v4 }
  0xb8   : > { %1252 = vmatpush3.bf16.msra.mxu1 %v1394_v33 }
  0xb9   : > { %1253 = vmatprep.subr.bf16.mxu1 %v1395_v59 }
  0xbb   : > { %1204 = vmatmul.mubr.msk.bf16.gmra.mrb[12].mxu1 %vm494_vm1, %v469_v3 }
  0xbc   : > { %1254 = vmatpush3.bf16.msra.mxu1 %v1395_v59 }
  0xbd   : > { %1195 = vmatmul.mubr.msk.bf16.gmra.mrb[24].mxu0 %vm494_vm1, %v460_v27 }
  0xbe   : > { %645 = vmatprep.mubr.bf16.mxu0 %v1405_v4 }
  0xc5   : > { %1196 = vmatmul.mubr.msk.bf16.gmra.mrb[28].mxu0 %vm494_vm1, %v461_v30 }
  0xc6   : > { %655 = vmatprep.mubr.bf16.mxu0 %v1405_v4 }
  0xcd   : > { %1197 = vmatmul.mubr.msk.bf16.gmra.mrb[32].mxu0 %vm494_vm1, %v462_v36 }
  0xce   : > { %665 = vmatprep.mubr.bf16.mxu0 %v1405_v4 }
  0xd5   : > { %1198 = vmatmul.mubr.msk.bf16.gmra.mrb[36].mxu0 %vm494_vm1, %v463_v41 }
  0xd6   : > { %675 = vmatprep.mubr.bf16.mxu0 %v1405_v4 }
  0xdd   : > { %1199 = vmatmul.mubr.msk.bf16.gmra.mrb[40].mxu0 %vm494_vm1, %v464_v46 }
  0xde   : > { %685 = vmatprep.mubr.bf16.mxu0 %v1405_v4  ;;  %v1396_v4 = vld [vmem:[%s2015_s3 + $0x38] sm:$0xff]  }
  0xdf   : > { %1255 = vmatprep.subr.bf16.mxu1 %v1396_v4 }
  0xe0   : > { %1256 = vmatpush3.bf16.msra.mxu1 %v1396_v4 }
  0xe5   : > { %1200 = vmatmul.mubr.msk.bf16.gmra.mrb[44].mxu0 %vm494_vm1, %v465_v51 }
 0x160   : > { %v1764_v15 = vpop.f32.mrb[0].mxu0 }
 0x161   : > { %v579_v44 = vpop.f32.mrb[1].mxu0 }
 0x162   : > { %v743_v48 = vadd.f32 %v1762_v61, %v579_v44  ;;  %v1767_v49 = vpop.f32.mrb[2].mxu0 }
 0x163   : > { %v583_v50 = vpop.f32.mrb[3].mxu0 }
 0x164   : > { %v744_v57 = vadd.f32 %v1762_v61, %v583_v50  ;;  %v775_v52 = vmax.f32 %v743_v48, 0.0 }
 0x166   : > { %v776_v53 = vmax.f32 %v744_v57, 0.0 }
 0x168   : > { %v807_v54 = vpack.c.bf16 %v776_v53, %v775_v52  ;;  %v1770_v2 = vpop.f32.mrb[4].mxu0 }
 0x169   : > { %v589_v1 = vpop.f32.mrb[5].mxu0 }
 0x16a   : > { %v745_v55 = vadd.f32 %v1762_v61, %v589_v1  ;;  %v1773_v56 = vpop.f32.mrb[6].mxu0  ;;  %1257 = vmatprep.mubr.bf16.mxu1 %v807_v54 }
 0x16b   : > { %v593_v38 = vpop.f32.mrb[7].mxu0 }
 0x16c   : > { %v746_v58 = vadd.f32 %v1762_v61, %v593_v38  ;;  %v777_v60 = vmax.f32 %v745_v55, 0.0 }
 0x16e   : > { %v778_v6 = vmax.f32 %v746_v58, 0.0 }
 0x170   : > { %v808_v20 = vpack.c.bf16 %v778_v6, %v777_v60  ;;  %v1776_v23 = vpop.f32.mrb[8].mxu0 }
 0x171   : > { %v599_v62 = vpop.f32.mrb[9].mxu0 }
 0x172   : > { %v747_v5 = vadd.f32 %v1762_v61, %v599_v62  ;;  %v1779_v63 = vpop.f32.mrb[10].mxu0  ;;  %1258 = vmatmul.mubr.bf16.vlgmr.msra.gmra.mrb[16].mxu1 %v808_v20 }
 0x173   : > { %v603_v0 = vpop.f32.mrb[11].mxu0 }
 0x174   : > { %v748_v13 = vadd.f32 %v1762_v61, %v603_v0  ;;  %v779_v10 = vmax.f32 %v747_v5, 0.0 }
 0x176   : > { %v780_v12 = vmax.f32 %v748_v13, 0.0  ;;  %v1782_v7 = vpop.f32.mrb[0].mxu1 }
 0x177   : > { %v699_v16 = vpop.f32.mrb[1].mxu1 }
 0x178   : > { %v809_v18 = vpack.c.bf16 %v780_v12, %v779_v10  ;;  %v1784_v29 = vpop.f32.mrb[12].mxu0  ;;  %v767_v24 = vadd.f32 %v1762_v61, %v699_v16  ;;  %v1787_v25 = vpop.f32.mrb[2].mxu1 }
 0x179   : > { %v609_v3 = vpop.f32.mrb[13].mxu0  ;;  %v703_v27 = vpop.f32.mrb[3].mxu1 }
 0x17a   : > { %v749_v14 = vadd.f32 %v1762_v61, %v609_v3  ;;  %v1790_v22 = vpop.f32.mrb[14].mxu0  ;;  %1261 = vmatprep.mubr.bf16.mxu1 %v809_v18  ;;  %v799_v21 = vmax.f32 %v767_v24, 0.0  ;;  %v768_v31 = vadd.f32 %v1762_v61, %v703_v27 }
 0x17b   : > { %v613_v30 = vpop.f32.mrb[15].mxu0 }
 0x17c   : > { %v750_v11 = vadd.f32 %v1762_v61, %v613_v30  ;;  %v800_v28 = vmax.f32 %v768_v31, 0.0  ;;  %v781_v8 = vmax.f32 %v749_v14, 0.0 }
 0x17e   : > { %v782_v32 = vmax.f32 %v750_v11, 0.0  ;;  %v1794_v36 = vpack.c.bf16 %v800_v28, %v799_v21  ;;  %v1796_v35 = vpop.f32.mrb[4].mxu1 }
 0x17f   : > { %v709_v34 = vpop.f32.mrb[5].mxu1 }
 0x180   : > { %v810_v9 = vpack.c.bf16 %v782_v32, %v781_v8  ;;  %v1798_v37 = vpop.f32.mrb[16].mxu0  ;;  %v769_v41 = vadd.f32 %v1762_v61, %v709_v34  ;;  %v1801_v40 = vpop.f32.mrb[6].mxu1 }
 0x181   : > { %v619_v39 = vpop.f32.mrb[17].mxu0  ;;  %v713_v17 = vpop.f32.mrb[7].mxu1 }
 0x182   : > { %v751_v42 = vadd.f32 %v1762_v61, %v619_v39  ;;  %v1804_v46 = vpop.f32.mrb[18].mxu0  ;;  %1262 = vmatmul.mubr.bf16.gmra.mrb[20].mxu1 %v810_v9  ;;  %v801_v45 = vmax.f32 %v769_v41, 0.0  ;;  %v770_v43 = vadd.f32 %v1762_v61, %v713_v17 }
 0x183   : > { %v623_v26 = vpop.f32.mrb[19].mxu0 }
 0x184   : > { %v752_v19 = vadd.f32 %v1762_v61, %v623_v26  ;;  %v802_v47 = vmax.f32 %v770_v43, 0.0  ;;  %v783_v51 = vmax.f32 %v751_v42, 0.0 }
 0x186   : > { %v784_v33 = vmax.f32 %v752_v19, 0.0  ;;  %v1808_v59 = vpack.c.bf16 %v802_v47, %v801_v45  ;;  %v1810_v4 = vpop.f32.mrb[8].mxu1 }
 0x187   : > { %v719_v44 = vpop.f32.mrb[9].mxu1 }
 0x188   : > { %v811_v48 = vpack.c.bf16 %v784_v33, %v783_v51  ;;  %v1812_v50 = vpop.f32.mrb[20].mxu0  ;;  %v771_v57 = vadd.f32 %v1762_v61, %v719_v44  ;;  %v1815_v52 = vpop.f32.mrb[10].mxu1 }
 0x189   : > { %v629_v53 = vpop.f32.mrb[21].mxu0  ;;  %v723_v54 = vpop.f32.mrb[11].mxu1 }
 0x18a   : > { %v753_v1 = vadd.f32 %v1762_v61, %v629_v53  ;;  %v1818_v55 = vpop.f32.mrb[22].mxu0  ;;  %1265 = vmatprep.mubr.bf16.mxu1 %v811_v48  ;;  %v803_v38 = vmax.f32 %v771_v57, 0.0  ;;  %v772_v58 = vadd.f32 %v1762_v61, %v723_v54 }
 0x18b   : > { %v633_v60 = vpop.f32.mrb[23].mxu0 }
 0x18c   : > { %v754_v6 = vadd.f32 %v1762_v61, %v633_v60  ;;  %v804_v20 = vmax.f32 %v772_v58, 0.0  ;;  %v785_v62 = vmax.f32 %v753_v1, 0.0 }
 0x18e   : > { %v786_v5 = vmax.f32 %v754_v6, 0.0  ;;  %v1822_v0 = vpack.c.bf16 %v804_v20, %v803_v38  ;;  %v1824_v13 = vpop.f32.mrb[12].mxu1 }
 0x18f   : > { %v729_v10 = vpop.f32.mrb[13].mxu1 }
 0x190   : > { %v812_v12 = vpack.c.bf16 %v786_v5, %v785_v62  ;;  %v1826_v16 = vpop.f32.mrb[24].mxu0  ;;  %v773_v18 = vadd.f32 %v1762_v61, %v729_v10  ;;  %v1829_v24 = vpop.f32.mrb[14].mxu1 }
 0x191   : > { %v639_v3 = vpop.f32.mrb[25].mxu0  ;;  %v733_v27 = vpop.f32.mrb[15].mxu1 }
 0x192   : > { %v755_v14 = vadd.f32 %v1762_v61, %v639_v3  ;;  %v1832_v21 = vpop.f32.mrb[26].mxu0  ;;  %1266 = vmatmul.mubr.bf16.gmra.mrb[24].mxu1 %v812_v12  ;;  %v805_v31 = vmax.f32 %v773_v18, 0.0  ;;  %v774_v30 = vadd.f32 %v1762_v61, %v733_v27 }
 0x193   : > { %v643_v11 = vpop.f32.mrb[27].mxu0 }
 0x194   : > { %v756_v28 = vadd.f32 %v1762_v61, %v643_v11  ;;  %v806_v8 = vmax.f32 %v774_v30, 0.0  ;;  %v787_v32 = vmax.f32 %v755_v14, 0.0 }
 0x196   : > { %v788_v34 = vmax.f32 %v756_v28, 0.0  ;;  %v822_v9 = vpack.c.bf16 %v806_v8, %v805_v31 }
 0x198   : > { %v813_v41 = vpack.c.bf16 %v788_v34, %v787_v32  ;;  %v1836_v39 = vpop.f32.mrb[28].mxu0 }
 0x199   : > { %v649_v17 = vpop.f32.mrb[29].mxu0 }
 0x19a   : > { %v757_v42 = vadd.f32 %v1762_v61, %v649_v17  ;;  %v1839_v45 = vpop.f32.mrb[30].mxu0  ;;  %1269 = vmatprep.mubr.bf16.mxu1 %v813_v41 }
 0x19b   : > { %v653_v43 = vpop.f32.mrb[31].mxu0 }
 0x19c   : > { %v758_v26 = vadd.f32 %v1762_v61, %v653_v43  ;;  %v789_v19 = vmax.f32 %v757_v42, 0.0 }
 0x19e   : > { %v790_v47 = vmax.f32 %v758_v26, 0.0 }
 0x1a0   : > { %v814_v51 = vpack.c.bf16 %v790_v47, %v789_v19  ;;  %v1842_v33 = vpop.f32.mrb[32].mxu0 }
 0x1a1   : > { %v659_v44 = vpop.f32.mrb[33].mxu0 }
 0x1a2   : > { %v759_v48 = vadd.f32 %v1762_v61, %v659_v44  ;;  %v1845_v57 = vpop.f32.mrb[34].mxu0  ;;  %1270 = vmatmul.mubr.bf16.gmra.mrb[28].mxu1 %v814_v51 }
 0x1a3   : > { %v663_v53 = vpop.f32.mrb[35].mxu0 }
 0x1a4   : > { %v760_v54 = vadd.f32 %v1762_v61, %v663_v53  ;;  %v791_v1 = vmax.f32 %v759_v48, 0.0  ;;  %v1872_v48 = vld [vmem:[%s2016_s4] ss:$0 sm:$0xff] }
 0x1a6   : > { %v792_v38 = vmax.f32 %v760_v54, 0.0 }
 0x1a8   : > { %v815_v58 = vpack.c.bf16 %v792_v38, %v791_v1  ;;  %v1848_v60 = vpop.f32.mrb[36].mxu0 }
 0x1a9   : > { %v669_v6 = vpop.f32.mrb[37].mxu0 }
 0x1aa   : > { %v761_v20 = vadd.f32 %v1762_v61, %v669_v6  ;;  %v1851_v62 = vpop.f32.mrb[38].mxu0  ;;  %1273 = vmatprep.mubr.bf16.mxu1 %v815_v58 }
 0x1ab   : > { %v673_v5 = vpop.f32.mrb[39].mxu0 }
 0x1ac   : > { %v762_v10 = vadd.f32 %v1762_v61, %v673_v5  ;;  %v793_v12 = vmax.f32 %v761_v20, 0.0 }
 0x1ae   : > { %v794_v18 = vmax.f32 %v762_v10, 0.0 }
 0x1b0   : > { %v816_v3 = vpack.c.bf16 %v794_v18, %v793_v12  ;;  %v1854_v27 = vpop.f32.mrb[40].mxu0 }
 0x1b1   : > { %v679_v14 = vpop.f32.mrb[41].mxu0 }
 0x1b2   : > { %v763_v31 = vadd.f32 %v1762_v61, %v679_v14  ;;  %v1857_v30 = vpop.f32.mrb[42].mxu0  ;;  %1274 = vmatmul.mubr.bf16.gmra.mrb[32].mxu1 %v816_v3 }
 0x1b3   : > { %v683_v11 = vpop.f32.mrb[43].mxu0 }
 0x1b4   : > { %v764_v28 = vadd.f32 %v1762_v61, %v683_v11  ;;  %v795_v8 = vmax.f32 %v763_v31, 0.0 }
 0x1b6   : > { %v796_v32 = vmax.f32 %v764_v28, 0.0 }
 0x1b8   : > { %v817_v34 = vpack.c.bf16 %v796_v32, %v795_v8  ;;  %v1860_v41 = vpop.f32.mrb[44].mxu0 }
 0x1b9   : > { %v689_v17 = vpop.f32.mrb[45].mxu0 }
 0x1ba   : > { %v765_v42 = vadd.f32 %v1762_v61, %v689_v17  ;;  %v1863_v43 = vpop.f32.mrb[46].mxu0  ;;  %1277 = vmatprep.mubr.bf16.mxu1 %v817_v34 }
 0x1bb   : > { %v693_v26 = vpop.f32.mrb[47].mxu0 }
 0x1bc   : > { %v766_v19 = vadd.f32 %v1762_v61, %v693_v26  ;;  %v797_v47 = vmax.f32 %v765_v42, 0.0 }
 0x1be   : > { %v798_v51 = vmax.f32 %v766_v19, 0.0 }
 0x1c0   : > { %v818_v44 = vpack.c.bf16 %v798_v51, %v797_v47 }
 0x1c2   : > { %1278 = vmatmul.mubr.bf16.gmra.mrb[36].mxu1 %v818_v44 }
 0x1c3   : > { %1281 = vmatprep.mubr.bf16.mxu1 %v1794_v36 }
 0x1ca   : > { %1282 = vmatmul.mubr.bf16.gmra.mrb[40].mxu1 %v1808_v59 }
 0x1cb   : > { %1285 = vmatprep.mubr.bf16.mxu1 %v1822_v0 }
 0x1d2   : > { %1286 = vmatmul.mubr.bf16.gmra.mrb[44].mxu1 %v822_v9 }
 0x245   : > { %v1259_v53 = vpop.f32.mrb[16].mxu1 }
 0x246   : > { %v937_v54 = vadd.f32 %v1259_v53, %v1872_v48  ;;  %v928_v61 = vpop.f32.mrb[17].mxu1 }
 0x247   : > { %v929_v36 = vadd.f32 %v1872_v48, %v928_v61  ;;  %v1260_v59 = vpop.f32.mrb[18].mxu1 }
 0x248   : > { %v1057_v0 = vmul.f32 %v937_v54, %v1770_v2  ;;  %v940_v9 = vadd.f32 %v1260_v59, %v1872_v48  ;;  %v931_v1 = vpop.f32.mrb[19].mxu1 }
 0x249   : > { %v1055_v38 = vmul.f32 %v929_v36, %v1764_v15  ;;  %v932_v58 = vadd.f32 %v1872_v48, %v931_v1 }
 0x24a   : > { %1090 = vst.msk [vmem:[%s1880_s9 + $0x10] sm:$0xff] %vm1087_vm2, %v1057_v0  ;;  %v1058_v6 = vmul.f32 %v940_v9, %v1773_v56 }
 0x24b   : > { %1088 = vst.msk [vmem:[%s1880_s9] sm:$0xff] %vm1087_vm2, %v1055_v38  ;;  %v1056_v20 = vmul.f32 %v932_v58, %v1767_v49 }
 0x24c   : > { %1091 = vst.msk [vmem:[%s1880_s9 + $0x18] sm:$0xff] %vm1087_vm2, %v1058_v6 }
 0x24d   : > { %1089 = vst.msk [vmem:[%s1880_s9 + $0x8] sm:$0xff] %vm1087_vm2, %v1056_v20 }
 0x255   : > { %v1263_v2 = vpop.f32.mrb[20].mxu1 }
 0x256   : > { %v953_v15 = vadd.f32 %v1263_v2, %v1872_v48  ;;  %v944_v5 = vpop.f32.mrb[21].mxu1 }
 0x257   : > { %v945_v10 = vadd.f32 %v1872_v48, %v944_v5  ;;  %v1264_v12 = vpop.f32.mrb[22].mxu1 }
 0x258   : > { %v1061_v56 = vmul.f32 %v953_v15, %v1784_v29  ;;  %v956_v18 = vadd.f32 %v1264_v12, %v1872_v48  ;;  %v947_v3 = vpop.f32.mrb[23].mxu1 }
 0x259   : > { %v1059_v49 = vmul.f32 %v945_v10, %v1776_v23  ;;  %v948_v14 = vadd.f32 %v1872_v48, %v947_v3 }
 0x25a   : > { %1094 = vst.msk [vmem:[%s1880_s9 + $0x30] sm:$0xff] %vm1087_vm2, %v1061_v56  ;;  %v1062_v31 = vmul.f32 %v956_v18, %v1790_v22 }
 0x25b   : > { %1092 = vst.msk [vmem:[%s1880_s9 + $0x20] sm:$0xff] %vm1087_vm2, %v1059_v49  ;;  %v1060_v11 = vmul.f32 %v948_v14, %v1779_v63 }
 0x25c   : > { %1095 = vst.msk [vmem:[%s1880_s9 + $0x38] sm:$0xff] %vm1087_vm2, %v1062_v31 }
 0x25d   : > { %1093 = vst.msk [vmem:[%s1880_s9 + $0x28] sm:$0xff] %vm1087_vm2, %v1060_v11 }
 0x265   : > { %v1267_v29 = vpop.f32.mrb[24].mxu1 }
 0x266   : > { %v969_v23 = vadd.f32 %v1267_v29, %v1872_v48  ;;  %v960_v28 = vpop.f32.mrb[25].mxu1 }
 0x267   : > { %v961_v8 = vadd.f32 %v1872_v48, %v960_v28  ;;  %v1268_v32 = vpop.f32.mrb[26].mxu1 }
 0x268   : > { %v1065_v22 = vmul.f32 %v969_v23, %v1812_v50  ;;  %v972_v34 = vadd.f32 %v1268_v32, %v1872_v48  ;;  %v963_v17 = vpop.f32.mrb[27].mxu1 }
 0x269   : > { %v1063_v63 = vmul.f32 %v961_v8, %v1798_v37  ;;  %v964_v42 = vadd.f32 %v1872_v48, %v963_v17 }
 0x26a   : > { %1098 = vst.msk [vmem:[%s1880_s9 + $0x50] sm:$0xff] %vm1087_vm2, %v1065_v22  ;;  %v1066_v26 = vmul.f32 %v972_v34, %v1818_v55 }
 0x26b   : > { %1096 = vst.msk [vmem:[%s1880_s9 + $0x40] sm:$0xff] %vm1087_vm2, %v1063_v63  ;;  %v1064_v19 = vmul.f32 %v964_v42, %v1804_v46 }
 0x26c   : > { %1099 = vst.msk [vmem:[%s1880_s9 + $0x58] sm:$0xff] %vm1087_vm2, %v1066_v26 }
 0x26d   : > { %1097 = vst.msk [vmem:[%s1880_s9 + $0x48] sm:$0xff] %vm1087_vm2, %v1064_v19 }
 0x275   : > { %v1271_v50 = vpop.f32.mrb[28].mxu1 }
 0x276   : > { %v985_v37 = vadd.f32 %v1271_v50, %v1872_v48  ;;  %v976_v47 = vpop.f32.mrb[29].mxu1 }
 0x277   : > { %v977_v51 = vadd.f32 %v1872_v48, %v976_v47  ;;  %v1272_v44 = vpop.f32.mrb[30].mxu1 }
 0x278   : > { %v1069_v55 = vmul.f32 %v985_v37, %v1836_v39  ;;  %v988_v53 = vadd.f32 %v1272_v44, %v1872_v48  ;;  %v979_v54 = vpop.f32.mrb[31].mxu1 }
 0x279   : > { %v1067_v46 = vmul.f32 %v977_v51, %v1826_v16  ;;  %v980_v61 = vadd.f32 %v1872_v48, %v979_v54 }
 0x27a   : > { %1102 = vst.msk [vmem:[%s1880_s9 + $0x70] sm:$0xff] %vm1087_vm2, %v1069_v55  ;;  %v1070_v36 = vmul.f32 %v988_v53, %v1839_v45 }
 0x27b   : > { %1100 = vst.msk [vmem:[%s1880_s9 + $0x60] sm:$0xff] %vm1087_vm2, %v1067_v46  ;;  %v1068_v59 = vmul.f32 %v980_v61, %v1832_v21 }
 0x27c   : > { %1103 = vst.msk [vmem:[%s1880_s9 + $0x78] sm:$0xff] %vm1087_vm2, %v1070_v36 }
 0x27d   : > { %1101 = vst.msk [vmem:[%s1880_s9 + $0x68] sm:$0xff] %vm1087_vm2, %v1068_v59 }
 0x285   : > { %v1275_v39 = vpop.f32.mrb[32].mxu1 }
 0x286   : > { %v1001_v16 = vadd.f32 %v1275_v39, %v1872_v48  ;;  %v992_v0 = vpop.f32.mrb[33].mxu1 }
 0x287   : > { %v993_v9 = vadd.f32 %v1872_v48, %v992_v0  ;;  %v1276_v1 = vpop.f32.mrb[34].mxu1 }
 0x288   : > { %v1073_v45 = vmul.f32 %v1001_v16, %v1848_v60  ;;  %v1004_v38 = vadd.f32 %v1276_v1, %v1872_v48  ;;  %v995_v58 = vpop.f32.mrb[35].mxu1 }
 0x289   : > { %v1071_v21 = vmul.f32 %v993_v9, %v1842_v33  ;;  %v996_v6 = vadd.f32 %v1872_v48, %v995_v58 }
 0x28a   : > { %1106 = vst.msk [vmem:[%s1880_s9 + $0x90] sm:$0xff] %vm1087_vm2, %v1073_v45  ;;  %v1074_v20 = vmul.f32 %v1004_v38, %v1851_v62 }
 0x28b   : > { %1104 = vst.msk [vmem:[%s1880_s9 + $0x80] sm:$0xff] %vm1087_vm2, %v1071_v21  ;;  %v1072_v2 = vmul.f32 %v996_v6, %v1845_v57 }
 0x28c   : > { %1107 = vst.msk [vmem:[%s1880_s9 + $0x98] sm:$0xff] %vm1087_vm2, %v1074_v20 }
 0x28d   : > { %1105 = vst.msk [vmem:[%s1880_s9 + $0x88] sm:$0xff] %vm1087_vm2, %v1072_v2 }
 0x295   : > { %v1279_v60 = vpop.f32.mrb[36].mxu1 }
 0x296   : > { %v1017_v33 = vadd.f32 %v1279_v60, %v1872_v48  ;;  %v1008_v15 = vpop.f32.mrb[37].mxu1 }
 0x297   : > { %v1009_v5 = vadd.f32 %v1872_v48, %v1008_v15  ;;  %v1280_v10 = vpop.f32.mrb[38].mxu1 }
 0x298   : > { %v1077_v62 = vmul.f32 %v1017_v33, %v1860_v41  ;;  %v1020_v12 = vadd.f32 %v1280_v10, %v1872_v48  ;;  %v1011_v56 = vpop.f32.mrb[39].mxu1 }
 0x299   : > { %v1075_v57 = vmul.f32 %v1009_v5, %v1854_v27  ;;  %v1012_v18 = vadd.f32 %v1872_v48, %v1011_v56 }
 0x29a   : > { %1110 = vst.msk [vmem:[%s1880_s9 + $0xb0] sm:$0xff] %vm1087_vm2, %v1077_v62  ;;  %v1078_v3 = vmul.f32 %v1020_v12, %v1863_v43 }
 0x29b   : > { %1108 = vst.msk [vmem:[%s1880_s9 + $0xa0] sm:$0xff] %vm1087_vm2, %v1075_v57  ;;  %v1076_v49 = vmul.f32 %v1012_v18, %v1857_v30 }
 0x29c   : > { %1111 = vst.msk [vmem:[%s1880_s9 + $0xb8] sm:$0xff] %vm1087_vm2, %v1078_v3 }
 0x29d   : > { %1109 = vst.msk [vmem:[%s1880_s9 + $0xa8] sm:$0xff] %vm1087_vm2, %v1076_v49  ;;  %v1283_v41 = vpop.f32.mrb[40].mxu1 }
 0x29e   : > { %v1033_v27 = vadd.f32 %v1283_v41, %v1872_v48  ;;  %v1024_v14 = vpop.f32.mrb[41].mxu1 }
 0x29f   : > { %v1025_v31 = vadd.f32 %v1872_v48, %v1024_v14  ;;  %v1284_v11 = vpop.f32.mrb[42].mxu1 }
 0x2a0   : > { %v1081_v43 = vmul.f32 %v1033_v27, %v1796_v35  ;;  %v1036_v29 = vadd.f32 %v1284_v11, %v1872_v48  ;;  %v1027_v23 = vpop.f32.mrb[43].mxu1 }
 0x2a1   : > { %v1079_v30 = vmul.f32 %v1025_v31, %v1782_v7  ;;  %v1028_v28 = vadd.f32 %v1872_v48, %v1027_v23 }
 0x2a2   : > { %1114 = vst.msk [vmem:[%s1880_s9 + $0xd0] sm:$0xff] %vm1087_vm2, %v1081_v43  ;;  %v1082_v8 = vmul.f32 %v1036_v29, %v1801_v40 }
 0x2a3   : > { %1112 = vst.msk [vmem:[%s1880_s9 + $0xc0] sm:$0xff] %vm1087_vm2, %v1079_v30  ;;  %v1080_v32 = vmul.f32 %v1028_v28, %v1787_v25 }
 0x2a4   : > { %1115 = vst.msk [vmem:[%s1880_s9 + $0xd8] sm:$0xff] %vm1087_vm2, %v1082_v8 }
 0x2a5   : > { %1113 = vst.msk [vmem:[%s1880_s9 + $0xc8] sm:$0xff] %vm1087_vm2, %v1080_v32  ;;  %v1287_v35 = vpop.f32.mrb[44].mxu1 }
 0x2a6   : > { %v1049_v7 = vadd.f32 %v1287_v35, %v1872_v48  ;;  %v1040_v22 = vpop.f32.mrb[45].mxu1 }
 0x2a7   : > { %v1041_v34 = vadd.f32 %v1872_v48, %v1040_v22  ;;  %v1288_v17 = vpop.f32.mrb[46].mxu1 }
 0x2a8   : > { %v1085_v40 = vmul.f32 %v1049_v7, %v1824_v13  ;;  %v1052_v63 = vadd.f32 %v1288_v17, %v1872_v48  ;;  %v1043_v42 = vpop.f32.mrb[47].mxu1 }
 0x2a9   : > { %v1083_v25 = vmul.f32 %v1041_v34, %v1810_v4  ;;  %v1044_v26 = vadd.f32 %v1872_v48, %v1043_v42 }
 0x2aa   : > { %1118 = vst.msk [vmem:[%s1880_s9 + $0xf0] sm:$0xff] %vm1087_vm2, %v1085_v40  ;;  %v1086_v19 = vmul.f32 %v1052_v63, %v1829_v24 }
 0x2ab   : > { %1116 = vst.msk [vmem:[%s1880_s9 + $0xe0] sm:$0xff] %vm1087_vm2, %v1083_v25  ;;  %v1084_v50 = vmul.f32 %v1044_v26, %v1815_v52 }
 0x2ac   : > { %1119 = vst.msk [vmem:[%s1880_s9 + $0xf8] sm:$0xff] %vm1087_vm2, %v1086_v19 }
 0x2ad   : > { %1117 = vst.msk [vmem:[%s1880_s9 + $0xe8] sm:$0xff] %vm1087_vm2, %v1084_v50 }
 0x2ae PF: > { %s15_s18 = sadd.s32 1, %s1403_s18  }
 0x2af   : > { %p12_p4 = scmp.ge.s32.totalorder %s15_s18, 4  }
 0x2b1   :  { %14 = sbr.rel (!%p12_p4) target bundleno = 1 (0x1), region = 70 }

</bundles_post_ra>
